<compile_context>
chip_gen: v6e
topology: v6e:2x2x1
jax: 0.10.0
libtpu: 0.0.40
codegen_flags: <defaults>
</compile_context>

<pallas_src>
import functools

import jax
import jax.numpy as jnp
from jax import lax
from jax.experimental import pallas as pl
from jax.experimental.pallas import tpu as pltpu


CHUNK = 256        # rows per in-kernel step (keeps intermediates ~32 vregs each)
MAX_TILE = 4096    # max rows per grid block (VMEM-budgeted, see vmem_limit_bytes)


def _cdiv(a, b):
    return -(-a // b)


def _round_up(a, b):
    return _cdiv(a, b) * b


def _block_diag2(a, b):
    """[[a, 0], [0, b]] without relying on jax.scipy."""
    m, n = a.shape
    p, q = b.shape
    z = jnp.zeros((m + p, n + q), a.dtype)
    z = z.at[:m, :n].set(a)
    z = z.at[m:, n:].set(b)
    return z


# ----------------------------------------------------------------------------
# One-time parameter fusion (hoisted out of the per-call path).
# ----------------------------------------------------------------------------
def prepare_params(params, compute_dtype=jnp.bfloat16):
    """Fuse the twin branches once:
         layer 1: w14 = [w1 | w4]            (sd, 2H)   in compute_dtype (matches x)
         layer 2: w25 = blockdiag(w2, w5)    (2H, 2H)   f32 (resident, tiny)
         layer 3: w3d = blockdiag(w3, w3)    (2H, 2A)   f32 (shared fc3, as in forward())
       Layers 2-3 stay f32 so intermediate activations keep f32 fidelity; only x and
       the first-layer weights are quantized to compute_dtype (the x stream is the
       only HBM traffic that matters)."""
    w1, b1, w2, b2, w3, b3, w4, b4, w5, b5 = params
    w14 = jnp.concatenate([w1, w4], axis=1).astype(compute_dtype)   # (sd, 2H)
    b14 = jnp.concatenate([b1, b4], axis=1).astype(jnp.float32)     # (1, 2H)
    w25 = _block_diag2(w2, w5).astype(jnp.float32)                  # (2H, 2H)
    b25 = jnp.concatenate([b2, b5], axis=1).astype(jnp.float32)     # (1, 2H)
    w3d = _block_diag2(w3, w3).astype(jnp.float32)                  # (2H, 2A)
    b3f = b3.astype(jnp.float32)                                    # (1, A)
    return (w14, b14, w25, b25, w3d, b3f)


# ----------------------------------------------------------------------------
# Kernel: per grid block, loop over 256-row chunks; 3 wide MXU matmuls per chunk.
# ----------------------------------------------------------------------------
def _doubleq_kernel(x_ref,
                    w14_ref, b14_ref,
                    w25_ref, b25_ref,
                    w3d_ref, b3_ref,
                    o_ref, *, action_dim, n_full, tail):
    # Resident (loop-invariant) weights / biases.
    w14 = w14_ref[...]
    b14 = b14_ref[...]
    w25 = w25_ref[...]
    b25 = b25_ref[...]
    w3d = w3d_ref[...]
    b3 = b3_ref[...]

    def compute(x):
        # Layer 1 (both branches fused along the output dim): (r, sd) @ (sd, 2H).
        h = jnp.dot(x, w14, preferred_element_type=jnp.float32) + b14
        h = jnp.maximum(h, 0.0)
        # Layer 2, block-diag [[w2,0],[0,w5]]: (r, 2H) @ (2H, 2H), f32.
        g = jnp.dot(h, w25, preferred_element_type=jnp.float32) + b25
        g = jnp.maximum(g, 0.0)
        # Layer 3, shared fc3 on both halves via block-diag: (r, 2H) @ (2H, 2A).
        z = jnp.dot(g, w3d, preferred_element_type=jnp.float32)
        # min(a1, a2); bias added after the min (min(x+b, y+b) == min(x, y) + b).
        return jnp.minimum(z[:, :action_dim], z[:, action_dim:]) + b3

    if n_full > 0:
        def body(c, carry):
            r0 = pl.multiple_of(c * CHUNK, CHUNK)
            out = compute(x_ref[pl.ds(r0, CHUNK), :])
            o_ref[pl.ds(r0, CHUNK), :] = out.astype(o_ref.dtype)
            return carry

        lax.fori_loop(0, n_full, body, 0)

    if tail > 0:  # static python check: leftover rows of this block (< CHUNK)
        off = n_full * CHUNK
        out = compute(x_ref[off:off + tail, :])
        o_ref[off:off + tail, :] = out.astype(o_ref.dtype)


# ----------------------------------------------------------------------------
# Wrapper
# ----------------------------------------------------------------------------
@jax.jit
def doubleq_forward(x, fused_params):
    """x: (bs, t, n_agents, state_dim) -> (bs, t, n_agents, action_dim) float32.
    fused_params: output of prepare_params()."""
    w14, b14, w25, b25, w3d, b3 = fused_params
    bs, t, na, state_dim = x.shape
    twoH = w14.shape[1]
    hidden_dim = twoH // 2
    action_dim = b3.shape[1]

    n_rows = bs * t * na
    # NOTE: if x arrives in f32 this cast is an extra (cheap) XLA pass; callers that
    # keep x in bf16 avoid it entirely and get the halved-DMA benefit for free.
    x2d = x.reshape(n_rows, state_dim).astype(w14.dtype)

    # ---- row-tile selection -------------------------------------------------
    if n_rows <= MAX_TILE:
        # Single maximal block (no pointless split on single-TC chips).
        tile_m = n_rows
        steps = 1
    else:
        steps = _cdiv(n_rows, MAX_TILE)
        if steps % 2:             # even step count -> balanced across v7x's two TCs
            steps += 1
        tile_m = _round_up(_cdiv(n_rows, steps), 8)   # sublane-aligned blocks
        steps = _cdiv(n_rows, tile_m)
    n_full, tail = divmod(tile_m, CHUNK)

    # ---- advisory cost (true math FLOPs only, not the block-diag zero halves) ----
    itemsize = jnp.dtype(w14.dtype).itemsize
    cost = pl.CostEstimate(
        flops=int(2 * n_rows * (state_dim * twoH
                                + 2 * hidden_dim * hidden_dim
                                + 2 * hidden_dim * action_dim)),
        transcendentals=0,
        bytes_accessed=int(n_rows * state_dim * itemsize
                           + state_dim * twoH * itemsize
                           + (twoH * twoH + twoH * 2 * action_dim) * 4
                           + n_rows * action_dim * 4),
    )

    full = lambda shape: pl.BlockSpec(shape, lambda i: (0, 0))

    # VMEM budget (lane-padded to 128): x block <= 4096*128*4B*2buf = 4 MiB,
    # out block <= 4096*128*4B*2buf = 4 MiB, weights + spills small -> well under 32 MiB
    # on every generation (v5e default is only 16 MiB, so set the limit explicitly).
    out = pl.pallas_call(
        functools.partial(_doubleq_kernel, action_dim=action_dim,
                          n_full=n_full, tail=tail),
        out_shape=jax.ShapeDtypeStruct((n_rows, action_dim), jnp.float32),
        grid_spec=pltpu.PrefetchScalarGridSpec(
            num_scalar_prefetch=0,
            grid=(steps,),
            in_specs=[
                pl.BlockSpec((tile_m, state_dim), lambda i: (i, 0)),   # x row tile
                full((state_dim, twoH)), full((1, twoH)),              # fused fc1|fc4
                full((twoH, twoH)), full((1, twoH)),                   # block-diag fc2/fc5
                full((twoH, 2 * action_dim)), full((1, action_dim)),   # block-diag fc3, b3
            ],
            out_specs=pl.BlockSpec((tile_m, action_dim), lambda i: (i, 0)),
        ),
        compiler_params=pltpu.CompilerParams(
            dimension_semantics=("parallel",),
            vmem_limit_bytes=32 * 1024 * 1024),
        cost_estimate=cost,
    )(x2d, w14, b14, w25, b25, w3d, b3)

    return out.reshape(bs, t, na, action_dim)


# ----------------------------------------------------------------------------
# Parameter init + pure-JAX reference
# ----------------------------------------------------------------------------
def init_params(key, state_dim, hidden_dim, action_dim):
    """Deterministic PyTorch-Linear-style (uniform) init; weights stored (in, out)."""
    def linear(k, fan_in, fan_out):
        kw, kb = jax.random.split(k)
        bound = 1.0 / jnp.sqrt(fan_in)
        w = jax.random.uniform(kw, (fan_in, fan_out), jnp.float32, -bound, bound)
        b = jax.random.uniform(kb, (1, fan_out), jnp.float32, -bound, bound)
        return w, b

    keys = jax.random.split(key, 6)
    w1, b1 = linear(keys[0], state_dim, hidden_dim)     # fc1
    w2, b2 = linear(keys[1], hidden_dim, hidden_dim)    # fc2
    w3, b3 = linear(keys[2], hidden_dim, action_dim)    # fc3
    w4, b4 = linear(keys[3], state_dim, hidden_dim)     # fc4
    w5, b5 = linear(keys[4], hidden_dim, hidden_dim)    # fc5
    _w6, _b6 = linear(keys[5], hidden_dim, action_dim)  # fc6: defined but unused in forward()
    return (w1, b1, w2, b2, w3, b3, w4, b4, w5, b5)


def _reference(x, params):
    """Pure-JAX f32 reference of DoubleQNetwork.forward (highest matmul precision)."""
    bs, t, na, sd = x.shape
    w1, b1, w2, b2, w3, b3, w4, b4, w5, b5 = params
    xf = x.reshape(-1, sd)
    dot = lambda a, b: jnp.dot(a, b, precision=jax.lax.Precision.HIGHEST)
    h1 = jax.nn.relu(dot(xf, w1) + b1)
    h2 = jax.nn.relu(dot(h1, w2) + b2)
    a1 = dot(h2, w3) + b3
    g1 = jax.nn.relu(dot(xf, w4) + b4)
    g2 = jax.nn.relu(dot(g1, w5) + b5)
    a2 = dot(g2, w3) + b3          # second branch uses fc3, as in the module
    return jnp.minimum(a1, a2).reshape(bs, t, na, -1)


if __name__ == "__main__":
    # Small shapes consistent with the module:
    # scheme: state vshape=16, obs vshape=12, n_agents=4 -> state_dim = 16+12+4 = 32
    # args:   n_actions = action_dim = 8; hidden_dim = 32
    bs, t, n_agents = 2, 8, 4
    state_dim, hidden_dim, action_dim = 32, 32, 8

    key = jax.random.PRNGKey(0)
    k_x, k_p, k_x2, k_x3 = jax.random.split(key, 4)
    x = jax.random.normal(k_x, (bs, t, n_agents, state_dim), dtype=jnp.float32)
    params = init_params(k_p, state_dim, hidden_dim, action_dim)
    ref = _reference(x, params)

    # 1) f32 path (exact module semantics), single block.
    fused_f32 = prepare_params(params, compute_dtype=jnp.float32)
    out = jax.block_until_ready(doubleq_forward(x, fused_f32))
    assert out.shape == (bs, t, n_agents, action_dim), out.shape
    err = float(jnp.max(jnp.abs(out - ref)))
    assert err < 1e-2, err

    # 2) default bf16 path (x + first-layer weights bf16; f32 accumulation, f32 layers 2-3).
    fused = prepare_params(params)  # bf16 default
    out_bf = jax.block_until_ready(doubleq_forward(x, fused))
    err_bf = float(jnp.max(jnp.abs(out_bf - ref)))
    assert err_bf < 6e-2, err_bf

    # 3) larger shape: multi-step "parallel" grid, in-kernel chunk loop, ragged last block.
    x2 = jax.random.normal(k_x2, (5, 218, n_agents, state_dim), dtype=jnp.float32)  # 4360 rows
    ref2 = _reference(x2, params)
    out2 = jax.block_until_ready(doubleq_forward(x2, fused))
    assert out2.shape == ref2.shape, out2.shape
    err2 = float(jnp.max(jnp.abs(out2 - ref2)))
    assert err2 < 6e-2, err2

    # 4) small row count that is not a multiple of 8 (tail-only path, full-array block).
    x3 = jax.random.normal(k_x3, (3, 7, n_agents, state_dim), dtype=jnp.float32)    # 84 rows
    ref3 = _reference(x3, params)
    out3 = jax.block_until_ready(doubleq_forward(x3, fused))
    err3 = float(jnp.max(jnp.abs(out3 - ref3)))
    assert err3 < 6e-2, err3

    print("KERNEL_OK")
</pallas_src>

<mosaic_0001>
module attributes {stable_mosaic.version = 11 : i64} {
  func.func @_doubleq_kernel(%arg0: i32, %arg1: memref<64x32xf32, #tpu.memory_space<vmem>>, %arg2: memref<32x64xf32, #tpu.memory_space<vmem>>, %arg3: memref<1x64xf32, #tpu.memory_space<vmem>>, %arg4: memref<64x64xf32, #tpu.memory_space<vmem>>, %arg5: memref<1x64xf32, #tpu.memory_space<vmem>>, %arg6: memref<64x16xf32, #tpu.memory_space<vmem>>, %arg7: memref<1x8xf32, #tpu.memory_space<vmem>>, %arg8: memref<64x8xf32, #tpu.memory_space<vmem>>) attributes {dimension_semantics = [#tpu.dimension_semantics<parallel>], iteration_bounds = array<i64: 1>, scalar_prefetch = 0 : i64, scratch_operands = 0 : i64, tpu.core_type = #tpu.core_type<tc>, window_params = [{transform_indices = @transform_0, window_bounds = array<i64: 64, 32>}, {pipeline_mode = #tpu.pipeline_mode<synchronous>, transform_indices = @transform_1, window_bounds = array<i64: 32, 64>}, {pipeline_mode = #tpu.pipeline_mode<synchronous>, transform_indices = @transform_2, window_bounds = array<i64: 1, 64>}, {pipeline_mode = #tpu.pipeline_mode<synchronous>, transform_indices = @transform_3, window_bounds = array<i64: 64, 64>}, {pipeline_mode = #tpu.pipeline_mode<synchronous>, transform_indices = @transform_4, window_bounds = array<i64: 1, 64>}, {pipeline_mode = #tpu.pipeline_mode<synchronous>, transform_indices = @transform_5, window_bounds = array<i64: 64, 16>}, {pipeline_mode = #tpu.pipeline_mode<synchronous>, transform_indices = @transform_6, window_bounds = array<i64: 1, 8>}, {transform_indices = @transform_7, window_bounds = array<i64: 64, 8>}]} {
    %c0 = arith.constant 0 : index
    %c0_0 = arith.constant 0 : index
    %0 = vector.load %arg2[%c0, %c0_0] : memref<32x64xf32, #tpu.memory_space<vmem>>, vector<32x64xf32>
    %c0_1 = arith.constant 0 : index
    %c0_2 = arith.constant 0 : index
    %1 = vector.load %arg3[%c0_1, %c0_2] : memref<1x64xf32, #tpu.memory_space<vmem>>, vector<1x64xf32>
    %c0_3 = arith.constant 0 : index
    %c0_4 = arith.constant 0 : index
    %2 = vector.load %arg4[%c0_3, %c0_4] : memref<64x64xf32, #tpu.memory_space<vmem>>, vector<64x64xf32>
    %c0_5 = arith.constant 0 : index
    %c0_6 = arith.constant 0 : index
    %3 = vector.load %arg5[%c0_5, %c0_6] : memref<1x64xf32, #tpu.memory_space<vmem>>, vector<1x64xf32>
    %c0_7 = arith.constant 0 : index
    %c0_8 = arith.constant 0 : index
    %4 = vector.load %arg6[%c0_7, %c0_8] : memref<64x16xf32, #tpu.memory_space<vmem>>, vector<64x16xf32>
    %c0_9 = arith.constant 0 : index
    %c0_10 = arith.constant 0 : index
    %5 = vector.load %arg7[%c0_9, %c0_10] : memref<1x8xf32, #tpu.memory_space<vmem>>, vector<1x8xf32>
    %c0_11 = arith.constant 0 : index
    %c0_12 = arith.constant 0 : index
    %6 = vector.load %arg1[%c0_11, %c0_12] : memref<64x32xf32, #tpu.memory_space<vmem>>, vector<64x32xf32>
    %cst = arith.constant dense<0.000000e+00> : vector<64x64xf32>
    %7 = tpu.matmul %6, %0, %cst {dimension_numbers = #tpu.dot_dimension_numbers<[1], [0], [0], [1], [0, 0, 1, 1], [], []>} : vector<64x32xf32>, vector<32x64xf32>, vector<64x64xf32> -> vector<64x64xf32>
    %8 = vector.broadcast %1 : vector<1x64xf32> to vector<64x64xf32>
    %9 = arith.addf %7, %8 : vector<64x64xf32>
    %cst_13 = arith.constant 0.000000e+00 : f32
    %10 = vector.broadcast %cst_13 : f32 to vector<64x64xf32>
    %11 = arith.maximumf %9, %10 : vector<64x64xf32>
    %cst_14 = arith.constant dense<0.000000e+00> : vector<64x64xf32>
    %12 = tpu.matmul %11, %2, %cst_14 {dimension_numbers = #tpu.dot_dimension_numbers<[1], [0], [0], [1], [0, 0, 1, 1], [], []>} : vector<64x64xf32>, vector<64x64xf32>, vector<64x64xf32> -> vector<64x64xf32>
    %13 = vector.broadcast %3 : vector<1x64xf32> to vector<64x64xf32>
    %14 = arith.addf %12, %13 : vector<64x64xf32>
    %cst_15 = arith.constant 0.000000e+00 : f32
    %15 = vector.broadcast %cst_15 : f32 to vector<64x64xf32>
    %16 = arith.maximumf %14, %15 : vector<64x64xf32>
    %cst_16 = arith.constant dense<0.000000e+00> : vector<64x16xf32>
    %17 = tpu.matmul %16, %4, %cst_16 {dimension_numbers = #tpu.dot_dimension_numbers<[1], [0], [0], [1], [0, 0, 1, 1], [], []>} : vector<64x64xf32>, vector<64x16xf32>, vector<64x16xf32> -> vector<64x16xf32>
    %18 = vector.extract_strided_slice %17 {offsets = [0, 0], sizes = [64, 8], strides = [1, 1]} : vector<64x16xf32> to vector<64x8xf32>
    %19 = vector.extract_strided_slice %17 {offsets = [0, 8], sizes = [64, 8], strides = [1, 1]} : vector<64x16xf32> to vector<64x8xf32>
    %20 = arith.minimumf %18, %19 : vector<64x8xf32>
    %21 = vector.broadcast %5 : vector<1x8xf32> to vector<64x8xf32>
    %22 = arith.addf %20, %21 : vector<64x8xf32>
    %c0_17 = arith.constant 0 : index
    %c0_18 = arith.constant 0 : index
    %23 = vector.load %arg8[%c0_17, %c0_18] : memref<64x8xf32, #tpu.memory_space<vmem>>, vector<64x8xf32>
    tpu.vector_store %arg8[%c0_17, %c0_18], %22 {strides = array<i32>} : memref<64x8xf32, #tpu.memory_space<vmem>>, vector<64x8xf32>,
    return
  }
  func.func @transform_0(%arg0: i32) -> (i32, i32) {
    %c0_i32 = arith.constant 0 : i32
    %c0_i32_0 = arith.constant 0 : i32
    return %arg0, %c0_i32 : i32, i32
  }
  func.func @transform_1(%arg0: i32) -> (i32, i32) {
    %c0_i32 = arith.constant 0 : i32
    %c0_i32_0 = arith.constant 0 : i32
    %c0_i32_1 = arith.constant 0 : i32
    return %c0_i32, %c0_i32_0 : i32, i32
  }
  func.func @transform_2(%arg0: i32) -> (i32, i32) {
    %c0_i32 = arith.constant 0 : i32
    %c0_i32_0 = arith.constant 0 : i32
    %c0_i32_1 = arith.constant 0 : i32
    return %c0_i32, %c0_i32_0 : i32, i32
  }
  func.func @transform_3(%arg0: i32) -> (i32, i32) {
    %c0_i32 = arith.constant 0 : i32
    %c0_i32_0 = arith.constant 0 : i32
    %c0_i32_1 = arith.constant 0 : i32
    return %c0_i32, %c0_i32_0 : i32, i32
  }
  func.func @transform_4(%arg0: i32) -> (i32, i32) {
    %c0_i32 = arith.constant 0 : i32
    %c0_i32_0 = arith.constant 0 : i32
    %c0_i32_1 = arith.constant 0 : i32
    return %c0_i32, %c0_i32_0 : i32, i32
  }
  func.func @transform_5(%arg0: i32) -> (i32, i32) {
    %c0_i32 = arith.constant 0 : i32
    %c0_i32_0 = arith.constant 0 : i32
    %c0_i32_1 = arith.constant 0 : i32
    return %c0_i32, %c0_i32_0 : i32, i32
  }
  func.func @transform_6(%arg0: i32) -> (i32, i32) {
    %c0_i32 = arith.constant 0 : i32
    %c0_i32_0 = arith.constant 0 : i32
    %c0_i32_1 = arith.constant 0 : i32
    return %c0_i32, %c0_i32_0 : i32, i32
  }
  func.func @transform_7(%arg0: i32) -> (i32, i32) {
    %c0_i32 = arith.constant 0 : i32
    %c0_i32_0 = arith.constant 0 : i32
    return %arg0, %c0_i32 : i32, i32
  }
}

</mosaic_0001>

<bundles_post_ra>
// kernel: doubleq_forward.1
= control target key start
LH: loop header
LB: loop body
LE: loop exit
PB: predicated region body
PF: predicated region fallthrough
CT: control target
= control target key end

     0   :  { %12 = vsyncpa [#allocation3], 0  ;;  %s972_s0 = inlined_call_operand.vmem [shape: f32[64,32], index: 0, kind: input, shape index: {}]   ;;  %s973_s1 = inlined_call_operand.hbm [shape: f32[32,64], index: 1, kind: input, shape index: {}]   ;;  %s974_s2 = inlined_call_operand.vmem [shape: f32[1,64], index: 2, kind: input, shape index: {}]   ;;  %s975_s3 = inlined_call_operand.hbm [shape: f32[64,64], index: 3, kind: input, shape index: {}]   ;;  %s976_s4 = inlined_call_operand.vmem [shape: f32[1,64], index: 4, kind: input, shape index: {}]   ;;  %s977_s5 = inlined_call_operand.vmem [shape: f32[64,16], index: 5, kind: input, shape index: {}]   ;;  %s978_s6 = inlined_call_operand.vmem [shape: f32[1,8], index: 6, kind: input, shape index: {}]   ;;  %s979_s7 = inlined_call_operand.hbm [shape: f32[64,8], index: 7, kind: output, shape index: {}]  }
   0x1   :  { %13 = vsyncpa [#allocation6], 0 }
   0x2   :  { %14 = vsyncpa [#allocation4], 0  ;;  %s819_s24 = smov [#allocation2]  }
   0x3   :  { %s22_s25 = sshll.u32 %s819_s24, 4  ;;  %s23_s25 = int_to_ptr.vmem [resolvable:$true] %s22_s25 }
   0x4   :  { %s761_s26 = scalar_lea.vmem %s23_s25, 512  ;;  %p766_p1 = scmp.lt.s32.totalorder %s23_s25, %s23_s25 }
   0x5   :  { %p762_p0 = scmp.ne.s32.totalorder %s23_s25, %s761_s26  ;;  %p767_p2 = scmp.lt.s32.totalorder %s761_s26, %s761_s26 }
   0x7   :  { %p768_p3 = por %p767_p2, %p766_p1 }
   0x9   :  { %p769_p4 = pnand %p768_p3, %p762_p0 }
   0xb   :  { %772 = shalt.err (!%p769_p4)
}
   0xc   :  { %s820_s27 = smov 128   ;;  %s821_s28 = smov 8  }
   0xd   :  { %28 = dma.hbm_to_vmem [thread:$0]  %s973_s1, 512, %s23_s25, [#allocation3], %s820_s27, %s820_s27, %s821_s28  }
   0xe   :  { %s822_s8 = smov [#allocation5]  }
   0xf   :  { %s36_s9 = sshll.u32 %s822_s8, 4  ;;  %s37_s9 = int_to_ptr.vmem [resolvable:$true] %s36_s9 }
  0x10   :  { %s781_s10 = scalar_lea.vmem %s37_s9, 1024  ;;  %p786_p6 = scmp.lt.s32.totalorder %s37_s9, %s37_s9 }
  0x11   :  { %p782_p5 = scmp.ne.s32.totalorder %s37_s9, %s781_s10  ;;  %p787_p7 = scmp.lt.s32.totalorder %s781_s10, %s781_s10 }
  0x13   :  { %p788_p8 = por %p787_p7, %p786_p6 }
  0x15   :  { %p789_p9 = pnand %p788_p8, %p782_p5 }
  0x17   :  { %792 = shalt.err (!%p789_p9)
}
  0x18   :  { %42 = dma.hbm_to_vmem [thread:$0]  %s975_s3, 1024, %s37_s9, [#allocation6], %s820_s27, %s820_s27, %s821_s28  }
  0x19   :  { %813 = dma.done.wait [#allocation3], 512  }
  0x1a   :  { %814 = vsyncadd [#allocation3], 4294966784 }
  0x1b   :  { %815 = dma.done.wait [#allocation6], 1024  }
  0x1c   :  { %816 = vsyncadd [#allocation6], 4294966272  ;;  %vm92_vm0 = vcmask 261120   ;;  %v58_v0 = vld [vmem:[#allocation2 + $0x18] sm:$0xff]  ;;  %v57_v1 = vld [vmem:[#allocation2 + $0x10] sm:$0xff]  ;;  %vm236_vm1 = vcmask 523264  }
  0x1d   :  { %655 = vmatprep.subr.mxu0 %v58_v0  ;;  %v78_v2 = vld [vmem:[%s972_s0] sm:$0xff]  ;;  %v56_v3 = vld [vmem:[#allocation2 + $0x8] sm:$0xff]  ;;  %v67_v5 = vld [vmem:[#allocation5 + $0x38] sm:$0xff]  ;;  %vm557_vm2 = vcmask 64512  }
  0x1e   :  { %656 = vmatpush3.msra.mxu0 %v58_v0  ;;  %663 = vmatprep.mubr.msk.f32.mxu0 %vm92_vm0, %v78_v2  ;;  %v55_v4 = vld [vmem:[#allocation2] sm:$0xff]  ;;  %v66_v6 = vld [vmem:[#allocation5 + $0x30] sm:$0xff]  ;;  %v79_v7 = vld [vmem:[%s972_s0 + $0x8] sm:$0xff] }
  0x1f   :  { %657 = vmatprep.subr.mxu0 %v57_v1  ;;  %675 = vmatprep.subr.mxu1 %v67_v5  ;;  %v65_v8 = vld [vmem:[#allocation5 + $0x28] sm:$0xff]  ;;  %v80_v9 = vld [vmem:[%s972_s0 + $0x10] sm:$0xff]  ;;  %v64_v10 = vld [vmem:[#allocation5 + $0x20] sm:$0xff] }
  0x20   :  { %658 = vmatpush3.msra.mxu0 %v57_v1  ;;  %676 = vmatpush3.msra.mxu1 %v67_v5  ;;  %v81_v11 = vld [vmem:[%s972_s0 + $0x18] sm:$0xff]  ;;  %v82_v12 = vld [vmem:[%s972_s0 + $0x20] sm:$0xff]  ;;  %v83_v13 = vld [vmem:[%s972_s0 + $0x28] sm:$0xff] }
  0x21   :  { %659 = vmatprep.subr.mxu0 %v56_v3  ;;  %677 = vmatprep.subr.mxu1 %v66_v6  ;;  %v84_v14 = vld [vmem:[%s972_s0 + $0x30] sm:$0xff]  ;;  %v85_v15 = vld [vmem:[%s972_s0 + $0x38] sm:$0xff]  ;;  %v61_v18 = vld [vmem:[#allocation5 + $0x8] sm:$0xff] }
  0x22   :  { %660 = vmatpush3.msra.mxu0 %v56_v3  ;;  %678 = vmatpush3.msra.mxu1 %v66_v6  ;;  %v63_v16 = vld [vmem:[#allocation5 + $0x18] sm:$0xff]  ;;  %v62_v17 = vld [vmem:[#allocation5 + $0x10] sm:$0xff]  ;;  %v60_v19 = vld [vmem:[#allocation5] sm:$0xff] }
  0x23   :  { %661 = vmatprep.subr.mxu0 %v55_v4  ;;  %679 = vmatprep.subr.mxu1 %v65_v8  ;;  %v76_v20 = vld [vmem:[%s977_s5 + $0x38] sm:$0xff]  ;;  %v75_v21 = vld [vmem:[%s977_s5 + $0x30] sm:$0xff]  ;;  %v74_v22 = vld [vmem:[%s977_s5 + $0x28] sm:$0xff] }
  0x24   :  { %662 = vmatpush3.msra.mxu0 %v55_v4  ;;  %680 = vmatpush3.msra.mxu1 %v65_v8  ;;  %v73_v23 = vld [vmem:[%s977_s5 + $0x20] sm:$0xff]  ;;  %v72_v24 = vld [vmem:[%s977_s5 + $0x18] sm:$0xff]  ;;  %v71_v50 = vld [vmem:[%s977_s5 + $0x10] sm:$0xff] }
  0x25   :  { %664 = vmatmul.mubr.msk.f32.vlgmr.msra.gmra.mxu0 %vm92_vm0, %v79_v7  ;;  %681 = vmatprep.subr.mxu1 %v64_v10  ;;  %v584_v25 = vld [vmem:[%s974_s2] ss:$0 sm:$0xff]  ;;  %v70_v51 = vld [vmem:[%s977_s5 + $0x8] sm:$0xff] }
  0x26   :  { %666 = vmatprep.mubr.msk.f32.mxu0 %vm92_vm0, %v80_v9  ;;  %682 = vmatpush3.msra.mxu1 %v64_v10  ;;  %v69_v52 = vld [vmem:[%s977_s5] sm:$0xff] }
  0x27   :  { %683 = vmatprep.subr.mxu1 %v63_v16  ;;  %703 = vmatprep.subr.mxu0 %v76_v20  ;;  %v593_v53 = vld [vmem:[%s976_s4] ss:$0 sm:$0xff]  ;;  %s823_s4 = smov 120  }
  0x28   :  { %684 = vmatpush3.msra.mxu1 %v63_v16  ;;  %704 = vmatpush3.msra.mxu0 %v76_v20 }
  0x29   :  { %667 = vmatmul.mubr.msk.f32.gmra.mxu0 %vm92_vm0, %v81_v11  ;;  %685 = vmatprep.subr.mxu1 %v62_v17 }
  0x2a   :  { %669 = vmatprep.mubr.msk.f32.mxu0 %vm92_vm0, %v82_v12  ;;  %686 = vmatpush3.msra.mxu1 %v62_v17 }
  0x2b   :  { %687 = vmatprep.subr.mxu1 %v61_v18  ;;  %705 = vmatprep.subr.mxu0 %v75_v21 }
  0x2c   :  { %688 = vmatpush3.msra.mxu1 %v61_v18  ;;  %706 = vmatpush3.msra.mxu0 %v75_v21 }
  0x2d   :  { %670 = vmatmul.mubr.msk.f32.gmra.mxu0 %vm92_vm0, %v83_v13  ;;  %689 = vmatprep.subr.mxu1 %v60_v19 }
  0x2e   :  { %672 = vmatprep.mubr.msk.f32.mxu0 %vm92_vm0, %v84_v14  ;;  %690 = vmatpush3.msra.mxu1 %v60_v19 }
  0x2f   :  { %731 = vmatprep.subr.mxu1 %v76_v20  ;;  %707 = vmatprep.subr.mxu0 %v74_v22 }
  0x30   :  { %708 = vmatpush3.msra.mxu0 %v74_v22 }
  0x31   :  { %673 = vmatmul.mubr.msk.f32.gmra.mxu0 %vm92_vm0, %v85_v15  ;;  %709 = vmatprep.subr.mxu0 %v73_v23 }
  0x32   :  { %710 = vmatpush3.msra.mxu0 %v73_v23 }
  0x33   :  { %711 = vmatprep.subr.mxu0 %v72_v24 }
  0x34   :  { %712 = vmatpush3.msra.mxu0 %v72_v24 }
  0x35   :  { %713 = vmatprep.subr.mxu0 %v71_v50 }
  0x36   :  { %714 = vmatpush3.msra.mxu0 %v71_v50 }
  0x37   :  { %715 = vmatprep.subr.mxu0 %v70_v51 }
  0x38   :  { %716 = vmatpush3.msra.mxu0 %v70_v51 }
  0x39   :  { %717 = vmatprep.subr.mxu0 %v69_v52 }
  0x3a   :  { %718 = vmatpush3.msra.mxu0 %v69_v52 }
  0xe5   :  { %v665_v26 = vpop.f32.mrf.mxu0 }
  0xe6   :  { %v189_v27 = vadd.f32 %v665_v26, %v584_v25 }
  0xe7   :  { %v183_v28 = vpop.f32.mrf.mxu0 }
  0xe8   :  { %v184_v29 = vadd.f32 %v584_v25, %v183_v28  ;;  %v223_v32 = vmax.f32 %v189_v27, 0.0 }
  0xe9   :  { %v668_v30 = vpop.f32.mrf.mxu0 }
  0xea   :  { %v222_v31 = vmax.f32 %v184_v29, 0.0  ;;  %v199_v33 = vadd.f32 %v668_v30, %v584_v25 }
  0xeb   :  { %v193_v34 = vpop.f32.mrf.mxu0 }
  0xec   :  { %v194_v35 = vadd.f32 %v584_v25, %v193_v34  ;;  %691 = vmatprep.mubr.msk.f32.mxu1 %vm236_vm1, %v222_v31  ;;  %v225_v39 = vmax.f32 %v199_v33, 0.0 }
  0xed   :  { %v671_v36 = vpop.f32.mrf.mxu0  ;;  %692 = vmatmul.mubr.msk.f32.vlgmr.msra.gmra.mxu1 %vm236_vm1, %v223_v32 }
  0xee   :  { %v224_v37 = vmax.f32 %v194_v35, 0.0  ;;  %v209_v38 = vadd.f32 %v671_v36, %v584_v25  ;;  %739 = vmatpush3.msra.mxu1 %v76_v20 }
  0xef   :  { %v203_v40 = vpop.f32.mrf.mxu0  ;;  %732 = vmatprep.subr.mxu1 %v75_v21 }
  0xf0   :  { %v204_v41 = vadd.f32 %v584_v25, %v203_v40  ;;  %694 = vmatprep.mubr.msk.f32.mxu1 %vm236_vm1, %v224_v37  ;;  %740 = vmatpush3.msra.mxu1 %v75_v21  ;;  %v227_v42 = vmax.f32 %v209_v38, 0.0 }
  0xf1   :  { %v674_v43 = vpop.f32.mrf.mxu0  ;;  %695 = vmatmul.mubr.msk.f32.gmra.mxu1 %vm236_vm1, %v225_v39  ;;  %733 = vmatprep.subr.mxu1 %v74_v22 }
  0xf2   :  { %v226_v44 = vmax.f32 %v204_v41, 0.0  ;;  %v219_v45 = vadd.f32 %v674_v43, %v584_v25  ;;  %741 = vmatpush3.msra.mxu1 %v74_v22  ;;  %v610_v22 = vld [vmem:[%s978_s6] ss:$0 sm:$0xff]  ;;  %s824_s6 = smov [#allocation7]  }
  0xf3   :  { %v213_v46 = vpop.f32.mrf.mxu0  ;;  %734 = vmatprep.subr.mxu1 %v73_v23  ;;  %s571_s23 = sshll.u32 %s824_s6, 4  ;;  %s572_s23 = int_to_ptr.vmem [resolvable:$true] %s571_s23 }
  0xf4   :  { %v214_v47 = vadd.f32 %v584_v25, %v213_v46  ;;  %697 = vmatprep.mubr.msk.f32.mxu1 %vm236_vm1, %v226_v44  ;;  %742 = vmatpush3.msra.mxu1 %v73_v23  ;;  %v229_v48 = vmax.f32 %v219_v45, 0.0  ;;  %s793_s24 = scalar_lea.vmem %s572_s23, 1024  ;;  %p798_p11 = scmp.lt.s32.totalorder %s572_s23, %s572_s23 }
  0xf5   :  { %698 = vmatmul.mubr.msk.f32.gmra.mxu1 %vm236_vm1, %v227_v42  ;;  %735 = vmatprep.subr.mxu1 %v72_v24  ;;  %p794_p10 = scmp.ne.s32.totalorder %s572_s23, %s793_s24  ;;  %p799_p12 = scmp.lt.s32.totalorder %s793_s24, %s793_s24 }
  0xf6   :  { %v228_v49 = vmax.f32 %v214_v47, 0.0  ;;  %743 = vmatpush3.msra.mxu1 %v72_v24 }
  0xf7   :  { %736 = vmatprep.subr.mxu1 %v71_v50  ;;  %p800_p13 = por %p799_p12, %p798_p11 }
  0xf8   :  { %700 = vmatprep.mubr.msk.f32.mxu1 %vm236_vm1, %v228_v49  ;;  %744 = vmatpush3.msra.mxu1 %v71_v50 }
  0xf9   :  { %701 = vmatmul.mubr.msk.f32.gmra.mxu1 %vm236_vm1, %v229_v48  ;;  %737 = vmatprep.subr.mxu1 %v70_v51  ;;  %p801_p0 = pnand %p800_p13, %p794_p10 }
  0xfa   :  { %745 = vmatpush3.msra.mxu1 %v70_v51 }
  0xfb   :  { %738 = vmatprep.subr.mxu1 %v69_v52 }
  0xfc   :  { %746 = vmatpush3.msra.mxu1 %v69_v52 }
 0x1ad   :  { %v693_v54 = vpop.f32.mrf.mxu1 }
 0x1ae   :  { %v333_v55 = vadd.f32 %v693_v54, %v593_v53 }
 0x1af   :  { %v327_v56 = vpop.f32.mrf.mxu1 }
 0x1b0   :  { %v328_v57 = vadd.f32 %v593_v53, %v327_v56  ;;  %v367_v60 = vmax.f32 %v333_v55, 0.0 }
 0x1b1   :  { %v696_v58 = vpop.f32.mrf.mxu1 }
 0x1b2   :  { %v366_v59 = vmax.f32 %v328_v57, 0.0  ;;  %v343_v61 = vadd.f32 %v696_v58, %v593_v53 }
 0x1b3   :  { %v337_v62 = vpop.f32.mrf.mxu1 }
 0x1b4   :  { %v338_v63 = vadd.f32 %v593_v53, %v337_v62  ;;  %719 = vmatprep.mubr.msk.f32.mxu0 %vm236_vm1, %v366_v59  ;;  %v369_v2 = vmax.f32 %v343_v61, 0.0 }
 0x1b5   :  { %v699_v0 = vpop.f32.mrf.mxu1  ;;  %720 = vmatmul.mubr.msk.f32.vlgmr.msra.gmra.mxu0 %vm236_vm1, %v367_v60 }
 0x1b6   :  { %v368_v1 = vmax.f32 %v338_v63, 0.0  ;;  %v353_v3 = vadd.f32 %v699_v0, %v593_v53 }
 0x1b7   :  { %v347_v4 = vpop.f32.mrf.mxu1 }
 0x1b8   :  { %v348_v5 = vadd.f32 %v593_v53, %v347_v4  ;;  %722 = vmatprep.mubr.msk.f32.mxu0 %vm236_vm1, %v368_v1  ;;  %v371_v8 = vmax.f32 %v353_v3, 0.0 }
 0x1b9   :  { %v702_v6 = vpop.f32.mrf.mxu1  ;;  %723 = vmatmul.mubr.msk.f32.gmra.mxu0 %vm236_vm1, %v369_v2 }
 0x1ba   :  { %v370_v7 = vmax.f32 %v348_v5, 0.0  ;;  %v363_v9 = vadd.f32 %v702_v6, %v593_v53 }
 0x1bb   :  { %v357_v10 = vpop.f32.mrf.mxu1 }
 0x1bc   :  { %v358_v11 = vadd.f32 %v593_v53, %v357_v10  ;;  %725 = vmatprep.mubr.msk.f32.mxu0 %vm236_vm1, %v370_v7  ;;  %v373_v13 = vmax.f32 %v363_v9, 0.0 }
 0x1bd   :  { %726 = vmatmul.mubr.msk.f32.gmra.mxu0 %vm236_vm1, %v371_v8 }
 0x1be   :  { %v372_v12 = vmax.f32 %v358_v11, 0.0 }
 0x1c0   :  { %728 = vmatprep.mubr.msk.f32.mxu1 %vm236_vm1, %v372_v12 }
 0x1c1   :  { %729 = vmatmul.mubr.msk.f32.vlgmr.msra.gmra.mxu1 %vm236_vm1, %v373_v13 }
 0x275   :  { %v721_v14 = vpop.f32.mrf.mxu0 }
 0x276   :  { %513 = vrot.lane.b32.xlu0 %v721_v14, %s823_s4 }
 0x277   :  { %v464_v15 = vpop.f32.mrf.mxu0 }
 0x279   :  { %v724_v16 = vpop.f32.mrf.mxu0 }
 0x27a   :  { %511 = vrot.lane.b32.xlu0 %v464_v15, %s823_s4  ;;  %517 = vrot.lane.b32.xlu1 %v724_v16, %s823_s4 }
 0x27b   :  { %v474_v17 = vpop.f32.mrf.mxu0 }
 0x27d   :  { %v727_v18 = vpop.f32.mrf.mxu0 }
 0x27e   :  { %515 = vrot.lane.b32.xlu1 %v474_v17, %s823_s4 }
 0x27f   :  { %v484_v19 = vpop.f32.mrf.mxu0 }
 0x280   :  { %519 = vrot.lane.b32.xlu0 %v484_v19, %s823_s4 }
 0x281   :  { %v730_v20 = vpop.f32.mrf.mxu1 }
 0x282   :  { %521 = vrot.lane.b32.xlu1 %v727_v18, %s823_s4 }
 0x283   :  { %v494_v21 = vpop.f32.mrf.mxu1 }
 0x284   :  { %523 = vrot.lane.b32.xlu0 %v494_v21, %s823_s4 }
 0x286   :  { %525 = vrot.lane.b32.xlu1 %v730_v20, %s823_s4 }
 0x2e8   :  { %v514_v23 = vpop.permute.xlu0 %513 }
 0x2e9   :  { %v536_v24 = vmin.f32 %v721_v14, %v514_v23 }
 0x2eb   :  { %v550_v25 = vadd.f32 %v610_v22, %v536_v24 }
 0x2ec   :  { %v512_v26 = vpop.permute.xlu0 %511  ;;  %v518_v27 = vpop.permute.xlu1 %517 }
 0x2ed   :  { %559 = vst.msk [vmem:[#allocation7 + $0x8] sm:$0xff] %vm557_vm2, %v550_v25  ;;  %v535_v28 = vmin.f32 %v464_v15, %v512_v26  ;;  %v538_v29 = vmin.f32 %v724_v16, %v518_v27 }
 0x2ef   :  { %v549_v30 = vadd.f32 %v610_v22, %v535_v28  ;;  %v552_v31 = vadd.f32 %v610_v22, %v538_v29 }
 0x2f0   :  { %v516_v32 = vpop.permute.xlu1 %515 }
 0x2f1   :  { %558 = vst.msk [vmem:[#allocation7] sm:$0xff] %vm557_vm2, %v549_v30  ;;  %561 = vst.msk [vmem:[#allocation7 + $0x18] sm:$0xff] %vm557_vm2, %v552_v31  ;;  %v537_v33 = vmin.f32 %v474_v17, %v516_v32 }
 0x2f2   :  { %v520_v34 = vpop.permute.xlu0 %519 }
 0x2f3   :  { %v551_v35 = vadd.f32 %v610_v22, %v537_v33  ;;  %v539_v36 = vmin.f32 %v484_v19, %v520_v34 }
 0x2f4   :  { %v522_v37 = vpop.permute.xlu1 %521 }
 0x2f5   :  { %560 = vst.msk [vmem:[#allocation7 + $0x10] sm:$0xff] %vm557_vm2, %v551_v35  ;;  %v553_v38 = vadd.f32 %v610_v22, %v539_v36  ;;  %v540_v39 = vmin.f32 %v727_v18, %v522_v37 }
 0x2f6   :  { %v524_v40 = vpop.permute.xlu0 %523 }
 0x2f7   :  { %562 = vst.msk [vmem:[#allocation7 + $0x20] sm:$0xff] %vm557_vm2, %v553_v38  ;;  %v554_v41 = vadd.f32 %v610_v22, %v540_v39  ;;  %v541_v42 = vmin.f32 %v494_v21, %v524_v40 }
 0x2f8   :  { %v526_v43 = vpop.permute.xlu1 %525 }
 0x2f9   :  { %563 = vst.msk [vmem:[#allocation7 + $0x28] sm:$0xff] %vm557_vm2, %v554_v41  ;;  %v555_v44 = vadd.f32 %v610_v22, %v541_v42  ;;  %v542_v45 = vmin.f32 %v730_v20, %v526_v43 }
 0x2fb   :  { %564 = vst.msk [vmem:[#allocation7 + $0x30] sm:$0xff] %vm557_vm2, %v555_v44  ;;  %v556_v46 = vadd.f32 %v610_v22, %v542_v45 }
 0x2fd   :  { %565 = vst.msk [vmem:[#allocation7 + $0x38] sm:$0xff] %vm557_vm2, %v556_v46 }
 0x2fe   :  { %804 = shalt.err (!%p801_p0)
}
 0x2ff   :  { %577 = dma.vmem_to_hbm [thread:$0]  %s572_s23, 1024, %s979_s7, [#allocation4], %s820_s27, %s820_s27, %s821_s28  }
 0x300   :  { %817 = dma.done.wait [#allocation4], 1024  }
 0x301   :  { %818 = vsyncadd [#allocation4], 4294966272 }
 0x302   :  { %581 = vsyncpa [#allocation3], 1 }
 0x303   :  { %582 = vsyncpa [#allocation6], 1 }
 0x304   :  { %583 = vsyncpa [#allocation4], 1 }

</bundles_post_ra>
